<compile_context>
chip_gen: v7x
topology: tpu7x:2x2x1
jax: 0.10.0
libtpu: 0.0.40
codegen_flags: <defaults>
</compile_context>

<pallas_src>
import jax
import jax.numpy as jnp
from jax.experimental import pallas as pl
from jax.experimental.pallas import tpu as pltpu


def _round_up(a, b):
    return ((a + b - 1) // b) * b


def _cdiv(a, b):
    return (a + b - 1) // b


def _vmem_capacity_bytes():
    """Physical VMEM per TensorCore; conservative fallback if the query fails."""
    try:
        cap = getattr(pltpu.get_tpu_info(), "vmem_capacity_bytes", None)
        if cap:
            return int(cap)
    except Exception:
        pass
    return 64 * 1024 * 1024   # v7x per-TC size == safest assumption


# --------------------------------------------------------------- kernels ----
def ffn_kernel_acc(x_ref, w1_ref, b1_ref, w2_ref, b2_ref, o_ref, acc_ref):
    """Variant with an f32 VMEM accumulator (used when the output dtype is not f32)."""
    k = pl.program_id(1)

    @pl.when(k == 0)
    def _():
        acc_ref[...] = jnp.zeros_like(acc_ref)

    # First matmul on the MXU (f32 accumulation); bias + ReLU on the VPU in f32.
    h = jnp.dot(x_ref[...], w1_ref[...], preferred_element_type=jnp.float32)
    h = jnp.maximum(h + b1_ref[...], 0.0)
    # TODO(synk): dropout is identity in eval mode; training-mode dropout would
    # need pltpu.prng_seed / pltpu.prng_random_bits and a mask here.

    # Second matmul: partial contraction over this d_ff slice, accumulated f32.
    acc_ref[...] += jnp.dot(h.astype(w2_ref.dtype), w2_ref[...],
                            preferred_element_type=jnp.float32)

    @pl.when(k == pl.num_programs(1) - 1)
    def _():
        o_ref[...] = (acc_ref[...] + b2_ref[...]).astype(o_ref.dtype)


def ffn_kernel_f32out(x_ref, w1_ref, b1_ref, w2_ref, b2_ref, o_ref):
    """f32-output variant: accumulate directly into the resident output tile
    (its block index is constant across the k axis), saving the scratch buffer
    and the epilogue copy."""
    k = pl.program_id(1)

    h = jnp.dot(x_ref[...], w1_ref[...], preferred_element_type=jnp.float32)
    h = jnp.maximum(h + b1_ref[...], 0.0)
    partial = jnp.dot(h.astype(w2_ref.dtype), w2_ref[...],
                      preferred_element_type=jnp.float32)

    @pl.when(k == 0)
    def _():
        o_ref[...] = partial

    @pl.when(k > 0)
    def _():
        o_ref[...] += partial

    @pl.when(k == pl.num_programs(1) - 1)
    def _():
        o_ref[...] += b2_ref[...]


# --------------------------------------------------------------- wrapper ----
def feed_forward(x, w1, b1, w2, b2, *, tm=None, tk_ff=None,
                 weight_vmem_budget=None, cast_operands_to_bf16=False):
    """x: [N, d_model]; w1: [d_model, d_ff]; b1: [d_ff]; w2: [d_ff, d_model]; b2: [d_model]."""
    N, d_model = x.shape
    d_ff = w1.shape[1]
    out_dtype = x.dtype                       # output dtype follows the caller's x

    if cast_operands_to_bf16:
        x = x.astype(jnp.bfloat16)
        w1 = w1.astype(jnp.bfloat16)
        w2 = w2.astype(jnp.bfloat16)

    x_it = jnp.dtype(x.dtype).itemsize
    w_it = jnp.dtype(w1.dtype).itemsize
    o_it = jnp.dtype(out_dtype).itemsize
    out_is_f32 = jnp.dtype(out_dtype) == jnp.dtype(jnp.float32)

    # ---- generation-aware budgets --------------------------------------
    vmem_cap = _vmem_capacity_bytes()
    if vmem_cap >= 96 * 1024 * 1024:          # 128 MiB parts (v5e / v6e)
        tm_max = 768
        default_wbudget = 64 * 1024 * 1024
    else:                                     # 64 MiB per-TC parts (v7x)
        tm_max = 512
        default_wbudget = 22 * 1024 * 1024
    if weight_vmem_budget is None:
        weight_vmem_budget = default_wbudget

    # ---- row tile: large (amortize weight streaming) with minimal padding ---
    if tm is None:
        if N <= tm_max:
            tm = _round_up(max(N, 8), 8)
        else:
            n_tiles = _cdiv(N, tm_max)
            tm = _round_up(_cdiv(N, n_tiles), 8)

    # ---- d_ff tile: weights-resident fast path, else largest fitting tile ---
    d_ff_pad = _round_up(d_ff, 128)
    if tk_ff is None:
        # Factor 4 = double-buffered (w1 + w2) slices.
        if 4 * d_model * d_ff_pad * w_it <= weight_vmem_budget:
            tk_ff = d_ff_pad              # single k step; weights DMA'd once total
        else:
            # Prefer >=256 (full 256-wide MXU contraction, >=512 B DMA segments);
            # prefer exact divisors of d_ff_pad to avoid extra zero padding.
            for cand in (2048, 1024, 512, 256):
                if d_ff_pad % cand == 0 and 4 * d_model * cand * w_it <= weight_vmem_budget:
                    tk_ff = cand
                    break
            if tk_ff is None:
                for cand in (2048, 1024, 512, 256, 128):
                    if 4 * d_model * cand * w_it <= weight_vmem_budget:
                        tk_ff = cand
                        break
            if tk_ff is None:
                tk_ff = 128
    d_ff_pad = _round_up(d_ff_pad, tk_ff)

    # ---- safety net: shrink tiles if the VMEM estimate overshoots ----------
    acc_row_bytes = 0 if out_is_f32 else d_model * 4

    def _vmem_est(tm_, tk_):
        return (2 * tm_ * d_model * x_it          # x tiles (double-buffered)
                + 2 * d_model * tk_ * w_it        # w1 tiles
                + 2 * tk_ * d_model * w_it        # w2 tiles
                + 2 * (tk_ + d_model) * 4         # biases (f32)
                + 2 * tm_ * d_model * o_it        # out tiles
                + tm_ * acc_row_bytes)            # f32 accumulator (non-f32 out only)

    soft_cap = int(0.8 * vmem_cap)
    while _vmem_est(tm, tk_ff) > soft_cap:
        if tk_ff > 256 and tk_ff % 256 == 0:      # halving keeps d_ff_pad % tk_ff == 0
            tk_ff //= 2
        elif tm > 64:
            tm = max(64, _round_up(tm // 2, 8))
        else:
            break

    # ---- zero-padding (numerically exact: padded w2 rows / b1 entries are 0) ---
    n_pad = _round_up(N, tm)
    if n_pad != N:
        x = jnp.pad(x, ((0, n_pad - N), (0, 0)))
    if d_ff_pad != d_ff:
        w1 = jnp.pad(w1, ((0, 0), (0, d_ff_pad - d_ff)))
        w2 = jnp.pad(w2, ((0, d_ff_pad - d_ff), (0, 0)))
        b1 = jnp.pad(b1, ((0, d_ff_pad - d_ff),))

    # Keep the elementwise math (bias add / ReLU) in f32 regardless of operand dtype.
    b1_2d = b1.reshape(1, d_ff_pad).astype(jnp.float32)
    b2_2d = b2.reshape(1, d_model).astype(jnp.float32)

    grid = (n_pad // tm, d_ff_pad // tk_ff)
    nk = grid[1]

    # VMEM limit: honest estimate + headroom, capped below the *queried* capacity.
    vmem_est = _vmem_est(tm, tk_ff)
    vmem_limit = int(min(max(int(1.25 * vmem_est) + (2 << 20), 32 * 1024 * 1024),
                         int(0.9 * vmem_cap)))

    # Cost estimate incl. weight re-streaming (once per row tile when k is tiled).
    weight_bytes = (w1.size + w2.size) * w_it
    cost = pl.CostEstimate(
        flops=4 * n_pad * d_model * d_ff_pad,
        transcendentals=0,
        bytes_accessed=(n_pad * d_model * x_it
                        + weight_bytes * (grid[0] if nk > 1 else 1)
                        + (b1_2d.size + b2_2d.size) * 4
                        + n_pad * d_model * o_it))

    in_specs = [
        pl.BlockSpec((tm, d_model), lambda i, k: (i, 0)),       # x row tile
        pl.BlockSpec((d_model, tk_ff), lambda i, k: (0, k)),    # w1 ff-slice
        pl.BlockSpec((1, tk_ff), lambda i, k: (0, k)),          # b1 ff-slice
        pl.BlockSpec((tk_ff, d_model), lambda i, k: (k, 0)),    # w2 ff-slice
        pl.BlockSpec((1, d_model), lambda i, k: (0, 0)),        # b2
    ]
    out_spec = pl.BlockSpec((tm, d_model), lambda i, k: (i, 0))

    if out_is_f32:
        kernel = ffn_kernel_f32out
        scratch = []
    else:
        kernel = ffn_kernel_acc
        scratch = [pltpu.VMEM((tm, d_model), jnp.float32)]

    out = pl.pallas_call(
        kernel,
        out_shape=jax.ShapeDtypeStruct((n_pad, d_model), out_dtype),
        grid_spec=pltpu.PrefetchScalarGridSpec(
            num_scalar_prefetch=0,
            grid=grid,
            in_specs=in_specs,
            out_specs=out_spec,
            scratch_shapes=scratch),
        compiler_params=pltpu.CompilerParams(
            dimension_semantics=("parallel", "arbitrary"),
            vmem_limit_bytes=vmem_limit),
        cost_estimate=cost,
    )(x, w1, b1_2d, w2, b2_2d)

    return out[:N] if n_pad != N else out


def feed_forward_ref(x, w1, b1, w2, b2):
    h = jnp.maximum(x @ w1 + b1, 0.0)
    return h @ w2 + b2


if __name__ == "__main__":
    key = jax.random.PRNGKey(0)

    # --- Test A: small shapes consistent with the module (tokens = batch*seq),
    #     f32, weights-resident single-k path, d_ff padded 64 -> 128. ---
    batch, seq, d_model, d_ff = 2, 8, 32, 64
    N = batch * seq
    kx, k1, k2, k3, k4, kB, kC = jax.random.split(key, 7)

    x = jax.random.normal(kx, (batch, seq, d_model), dtype=jnp.float32)
    bound1 = 1.0 / (d_model ** 0.5)
    bound2 = 1.0 / (d_ff ** 0.5)
    w1 = jax.random.uniform(k1, (d_model, d_ff), jnp.float32, -bound1, bound1)
    b1 = jax.random.uniform(k2, (d_ff,), jnp.float32, -bound1, bound1)
    w2 = jax.random.uniform(k3, (d_ff, d_model), jnp.float32, -bound2, bound2)
    b2 = jax.random.uniform(k4, (d_model,), jnp.float32, -bound2, bound2)

    x2d = x.reshape(N, d_model)
    out = feed_forward(x2d, w1, b1, w2, b2)
    out = jax.block_until_ready(out).reshape(batch, seq, d_model)
    ref = feed_forward_ref(x2d, w1, b1, w2, b2).reshape(batch, seq, d_model)
    assert out.shape == (batch, seq, d_model)
    assert jnp.allclose(out, ref, atol=1e-4, rtol=1e-4), "f32 mismatch vs reference"

    # --- Test B: bf16 operands (f32 accumulation), ragged N, irregular d_ff
    #     (320 -> padded 384), forced tk_ff=128 -> 3 k-steps, scratch kernel. ---
    Nb, dmb, dffb = 380, 128, 320
    ka, kb, kc = jax.random.split(kB, 3)
    xb = jax.random.normal(ka, (Nb, dmb), dtype=jnp.float32)
    w1b = jax.random.uniform(kb, (dmb, dffb), jnp.float32,
                             -1.0 / dmb ** 0.5, 1.0 / dmb ** 0.5)
    w2b = jax.random.uniform(kc, (dffb, dmb), jnp.float32,
                             -1.0 / dffb ** 0.5, 1.0 / dffb ** 0.5)
    b1b = jnp.zeros((dffb,), jnp.float32)
    b2b = jnp.zeros((dmb,), jnp.float32)

    out_bf16 = feed_forward(xb.astype(jnp.bfloat16), w1b.astype(jnp.bfloat16),
                            b1b, w2b.astype(jnp.bfloat16), b2b, tk_ff=128)
    out_bf16 = jax.block_until_ready(out_bf16)
    ref_bf16 = feed_forward_ref(xb.astype(jnp.bfloat16).astype(jnp.float32),
                                w1b.astype(jnp.bfloat16).astype(jnp.float32),
                                b1b,
                                w2b.astype(jnp.bfloat16).astype(jnp.float32),
                                b2b)
    assert out_bf16.shape == (Nb, dmb)
    assert jnp.allclose(out_bf16.astype(jnp.float32), ref_bf16,
                        atol=3e-2, rtol=3e-2), "bf16 mismatch vs reference"

    # --- Test C: f32 output with a tiled d_ff axis (forced tk_ff=128, 4 k-steps)
    #     -> exercises the accumulate-into-o_ref kernel + ragged row padding. ---
    Nc, dmc, dffc = 260, 128, 512
    kd, ke, kf = jax.random.split(kC, 3)
    xc = jax.random.normal(kd, (Nc, dmc), dtype=jnp.float32)
    w1c = jax.random.uniform(ke, (dmc, dffc), jnp.float32,
                             -1.0 / dmc ** 0.5, 1.0 / dmc ** 0.5)
    w2c = jax.random.uniform(kf, (dffc, dmc), jnp.float32,
                             -1.0 / dffc ** 0.5, 1.0 / dffc ** 0.5)
    b1c = jnp.full((dffc,), 0.01, jnp.float32)
    b2c = jnp.full((dmc,), -0.02, jnp.float32)

    out_c = feed_forward(xc, w1c, b1c, w2c, b2c, tk_ff=128)
    out_c = jax.block_until_ready(out_c)
    ref_c = feed_forward_ref(xc, w1c, b1c, w2c, b2c)
    assert out_c.shape == (Nc, dmc)
    assert jnp.allclose(out_c, ref_c, atol=1e-4, rtol=1e-4), "f32 tiled-k mismatch"

    print("KERNEL_OK")
</pallas_src>

<mosaic_0001>
module attributes {stable_mosaic.version = 11 : i64} {
  func.func @ffn_kernel_f32out(%arg0: i32, %arg1: i32, %arg2: memref<16x32xf32, #tpu.memory_space<vmem>>, %arg3: memref<32x128xf32, #tpu.memory_space<vmem>>, %arg4: memref<1x128xf32, #tpu.memory_space<vmem>>, %arg5: memref<128x32xf32, #tpu.memory_space<vmem>>, %arg6: memref<1x32xf32, #tpu.memory_space<vmem>>, %arg7: memref<16x32xf32, #tpu.memory_space<vmem>>) attributes {dimension_semantics = [#tpu.dimension_semantics<parallel>, #tpu.dimension_semantics<arbitrary>], iteration_bounds = array<i64: 1, 1>, scalar_prefetch = 0 : i64, scratch_operands = 0 : i64, tpu.core_type = #tpu.core_type<tc>, window_params = [{transform_indices = @transform_0, window_bounds = array<i64: 16, 32>}, {transform_indices = @transform_1, window_bounds = array<i64: 32, 128>}, {transform_indices = @transform_2, window_bounds = array<i64: 1, 128>}, {transform_indices = @transform_3, window_bounds = array<i64: 128, 32>}, {pipeline_mode = #tpu.pipeline_mode<synchronous>, transform_indices = @transform_4, window_bounds = array<i64: 1, 32>}, {transform_indices = @transform_5, window_bounds = array<i64: 16, 32>}]} {
    %c0 = arith.constant 0 : index
    %c0_0 = arith.constant 0 : index
    %0 = vector.load %arg2[%c0, %c0_0] : memref<16x32xf32, #tpu.memory_space<vmem>>, vector<16x32xf32>
    %c0_1 = arith.constant 0 : index
    %c0_2 = arith.constant 0 : index
    %1 = vector.load %arg3[%c0_1, %c0_2] : memref<32x128xf32, #tpu.memory_space<vmem>>, vector<32x128xf32>
    %cst = arith.constant dense<0.000000e+00> : vector<16x128xf32>
    %2 = tpu.matmul %0, %1, %cst {dimension_numbers = #tpu.dot_dimension_numbers<[1], [0], [0], [1], [0, 0, 1, 1], [], []>} : vector<16x32xf32>, vector<32x128xf32>, vector<16x128xf32> -> vector<16x128xf32>
    %c0_3 = arith.constant 0 : index
    %c0_4 = arith.constant 0 : index
    %3 = vector.load %arg4[%c0_3, %c0_4] : memref<1x128xf32, #tpu.memory_space<vmem>>, vector<1x128xf32>
    %4 = vector.broadcast %3 : vector<1x128xf32> to vector<16x128xf32>
    %5 = arith.addf %2, %4 : vector<16x128xf32>
    %cst_5 = arith.constant 0.000000e+00 : f32
    %6 = vector.broadcast %cst_5 : f32 to vector<16x128xf32>
    %7 = arith.maximumf %5, %6 : vector<16x128xf32>
    %c0_6 = arith.constant 0 : index
    %c0_7 = arith.constant 0 : index
    %8 = vector.load %arg5[%c0_6, %c0_7] : memref<128x32xf32, #tpu.memory_space<vmem>>, vector<128x32xf32>
    %cst_8 = arith.constant dense<0.000000e+00> : vector<16x32xf32>
    %9 = tpu.matmul %7, %8, %cst_8 {dimension_numbers = #tpu.dot_dimension_numbers<[1], [0], [0], [1], [0, 0, 1, 1], [], []>} : vector<16x128xf32>, vector<128x32xf32>, vector<16x32xf32> -> vector<16x32xf32>
    %c0_i32 = arith.constant 0 : i32
    %10 = arith.cmpi eq, %arg1, %c0_i32 : i32
    %11 = arith.extui %10 : i1 to i32
    %c0_i32_9 = arith.constant 0 : i32
    %12 = arith.cmpi ne, %11, %c0_i32_9 : i32
    scf.if %12 {
      %c0_14 = arith.constant 0 : index
      %c0_15 = arith.constant 0 : index
      %19 = vector.load %arg7[%c0_14, %c0_15] : memref<16x32xf32, #tpu.memory_space<vmem>>, vector<16x32xf32>
      tpu.vector_store %arg7[%c0_14, %c0_15], %9 {strides = array<i32>} : memref<16x32xf32, #tpu.memory_space<vmem>>, vector<16x32xf32>,
    } else {
    }
    %c0_i32_10 = arith.constant 0 : i32
    %13 = arith.cmpi sgt, %arg1, %c0_i32_10 : i32
    %14 = arith.extui %13 : i1 to i32
    %c0_i32_11 = arith.constant 0 : i32
    %15 = arith.cmpi ne, %14, %c0_i32_11 : i32
    scf.if %15 {
      %c0_14 = arith.constant 0 : index
      %c0_15 = arith.constant 0 : index
      %19 = vector.load %arg7[%c0_14, %c0_15] : memref<16x32xf32, #tpu.memory_space<vmem>>, vector<16x32xf32>
      %20 = arith.addf %19, %9 : vector<16x32xf32>
      %c0_16 = arith.constant 0 : index
      %c0_17 = arith.constant 0 : index
      %21 = vector.load %arg7[%c0_16, %c0_17] : memref<16x32xf32, #tpu.memory_space<vmem>>, vector<16x32xf32>
      tpu.vector_store %arg7[%c0_16, %c0_17], %20 {strides = array<i32>} : memref<16x32xf32, #tpu.memory_space<vmem>>, vector<16x32xf32>,
    } else {
    }
    %c0_i32_12 = arith.constant 0 : i32
    %16 = arith.cmpi eq, %arg1, %c0_i32_12 : i32
    %17 = arith.extui %16 : i1 to i32
    %c0_i32_13 = arith.constant 0 : i32
    %18 = arith.cmpi ne, %17, %c0_i32_13 : i32
    scf.if %18 {
      %c0_14 = arith.constant 0 : index
      %c0_15 = arith.constant 0 : index
      %19 = vector.load %arg7[%c0_14, %c0_15] : memref<16x32xf32, #tpu.memory_space<vmem>>, vector<16x32xf32>
      %c0_16 = arith.constant 0 : index
      %c0_17 = arith.constant 0 : index
      %20 = vector.load %arg6[%c0_16, %c0_17] : memref<1x32xf32, #tpu.memory_space<vmem>>, vector<1x32xf32>
      %21 = vector.broadcast %20 : vector<1x32xf32> to vector<16x32xf32>
      %22 = arith.addf %19, %21 : vector<16x32xf32>
      %c0_18 = arith.constant 0 : index
      %c0_19 = arith.constant 0 : index
      %23 = vector.load %arg7[%c0_18, %c0_19] : memref<16x32xf32, #tpu.memory_space<vmem>>, vector<16x32xf32>
      tpu.vector_store %arg7[%c0_18, %c0_19], %22 {strides = array<i32>} : memref<16x32xf32, #tpu.memory_space<vmem>>, vector<16x32xf32>,
    } else {
    }
    return
  }
  func.func @transform_0(%arg0: i32, %arg1: i32) -> (i32, i32) {
    %c0_i32 = arith.constant 0 : i32
    %c0_i32_0 = arith.constant 0 : i32
    return %arg0, %c0_i32 : i32, i32
  }
  func.func @transform_1(%arg0: i32, %arg1: i32) -> (i32, i32) {
    %c0_i32 = arith.constant 0 : i32
    %c0_i32_0 = arith.constant 0 : i32
    return %c0_i32, %arg1 : i32, i32
  }
  func.func @transform_2(%arg0: i32, %arg1: i32) -> (i32, i32) {
    %c0_i32 = arith.constant 0 : i32
    %c0_i32_0 = arith.constant 0 : i32
    return %c0_i32, %arg1 : i32, i32
  }
  func.func @transform_3(%arg0: i32, %arg1: i32) -> (i32, i32) {
    %c0_i32 = arith.constant 0 : i32
    %c0_i32_0 = arith.constant 0 : i32
    return %arg1, %c0_i32 : i32, i32
  }
  func.func @transform_4(%arg0: i32, %arg1: i32) -> (i32, i32) {
    %c0_i32 = arith.constant 0 : i32
    %c0_i32_0 = arith.constant 0 : i32
    %c0_i32_1 = arith.constant 0 : i32
    return %c0_i32, %c0_i32_0 : i32, i32
  }
  func.func @transform_5(%arg0: i32, %arg1: i32) -> (i32, i32) {
    %c0_i32 = arith.constant 0 : i32
    %c0_i32_0 = arith.constant 0 : i32
    return %arg0, %c0_i32 : i32, i32
  }
}

</mosaic_0001>

<bundles_post_ra>
// kernel: tpu_custom_call.1
= control target key start
LH: loop header
LB: loop body
LE: loop exit
PB: predicated region body
PF: predicated region fallthrough
CT: control target
= control target key end

     0   :  { %vm34_vm0 = vcmask 261120   ;;  %s521_s0 = inlined_call_operand.vmem [shape: f32[16,32], index: 0, kind: input, shape index: {}]   ;;  %s522_s1 = inlined_call_operand.vmem [shape: f32[32,128], index: 1, kind: input, shape index: {}]   ;;  %s523_s2 = inlined_call_operand.vmem [shape: f32[1,128], index: 2, kind: input, shape index: {}]   ;;  %s524_s3 = inlined_call_operand.vmem [shape: f32[128,32], index: 3, kind: input, shape index: {}]   ;;  %s525_s4 = inlined_call_operand.vmem [shape: f32[1,32], index: 4, kind: input, shape index: {}]   ;;  %s526_s5 = inlined_call_operand.hbm [shape: f32[16,32], index: 5, kind: output, shape index: {}]  }
   0x1   :  { %v23_v0 = vld [vmem:[%s522_s1] sm:$0xff]  ;;  %v24_v1 = vld [vmem:[%s522_s1 + $0x8] sm:$0xff]  ;;  %v25_v2 = vld [vmem:[%s522_s1 + $0x10] sm:$0xff] }
   0x2   :  { %v331_v3 = vpack.c.bf16 %v24_v1, %v23_v0  ;;  %v26_v4 = vld [vmem:[%s522_s1 + $0x18] sm:$0xff]  ;;  %v21_v5 = vld [vmem:[%s521_s0] sm:$0xff]  ;;  %v119_v8 = vld [vmem:[%s524_s3 + $0x8] sm:$0xff] }
   0x3   :  { %v335_v6 = vpack.c.bf16 %v26_v4, %v25_v2  ;;  %293 = vmatprep.mubr.msk.f32.mxu0 %vm34_vm0, %v21_v5  ;;  %v118_v7 = vld [vmem:[%s524_s3] sm:$0xff]  ;;  %v120_v9 = vld [vmem:[%s524_s3 + $0x10] sm:$0xff]  ;;  %v121_v11 = vld [vmem:[%s524_s3 + $0x18] sm:$0xff] }
   0x4   :  { %332 = vmatprep.subr.bf16.mxu0 %v331_v3  ;;  %v339_v10 = vpack.c.bf16 %v119_v8, %v118_v7  ;;  %v343_v12 = vpack.c.bf16 %v121_v11, %v120_v9  ;;  %v122_v13 = vld [vmem:[%s524_s3 + $0x20] sm:$0xff]  ;;  %v123_v14 = vld [vmem:[%s524_s3 + $0x28] sm:$0xff] }
   0x5   :  { %334 = vmatpush3.bf16.msra.mxu0 %v331_v3 }
   0x6   :  { %336 = vmatprep.subr.bf16.mxu0 %v335_v6  ;;  %340 = vmatprep.subr.bf16.mxu1 %v339_v10 }
   0x7   :  { %342 = vmatpush3.bf16.msra.mxu1 %v339_v10 }
   0x8   :  { %10 = vsyncpa [#allocation3], 0  ;;  %344 = vmatprep.subr.bf16.mxu1 %v343_v12  ;;  %v347_v15 = vpack.c.bf16 %v123_v14, %v122_v13  ;;  %v22_v16 = vld [vmem:[%s521_s0 + $0x8] sm:$0xff]  ;;  %v124_v17 = vld [vmem:[%s524_s3 + $0x30] sm:$0xff]  ;;  %s398_s12 = smov [#allocation2]  }
   0x9   :  { %338 = vmatpush3.bf16.msra.mxu0 %v335_v6  ;;  %v125_v18 = vld [vmem:[%s524_s3 + $0x38] sm:$0xff]  ;;  %v126_v20 = vld [vmem:[%s524_s3 + $0x40] sm:$0xff]  ;;  %v127_v21 = vld [vmem:[%s524_s3 + $0x48] sm:$0xff] }
   0xa   :  { %v351_v19 = vpack.c.bf16 %v125_v18, %v124_v17  ;;  %v355_v22 = vpack.c.bf16 %v127_v21, %v126_v20  ;;  %v128_v23 = vld [vmem:[%s524_s3 + $0x50] sm:$0xff]  ;;  %v129_v24 = vld [vmem:[%s524_s3 + $0x58] sm:$0xff]  ;;  %v130_v26 = vld [vmem:[%s524_s3 + $0x60] sm:$0xff] }
   0xb   :  { %346 = vmatpush3.bf16.msra.mxu1 %v343_v12  ;;  %v359_v25 = vpack.c.bf16 %v129_v24, %v128_v23  ;;  %v131_v27 = vld [vmem:[%s524_s3 + $0x68] sm:$0xff]  ;;  %v132_v29 = vld [vmem:[%s524_s3 + $0x70] sm:$0xff]  ;;  %v133_v30 = vld [vmem:[%s524_s3 + $0x78] sm:$0xff] }
   0xc   :  { %294 = vmatmul.mubr.msk.f32.vlgmr.msra.gmra.mrb[0].mxu0 %vm34_vm0, %v22_v16  ;;  %348 = vmatprep.subr.bf16.mxu1 %v347_v15  ;;  %v363_v28 = vpack.c.bf16 %v131_v27, %v130_v26  ;;  %v367_v31 = vpack.c.bf16 %v133_v30, %v132_v29  ;;  %v257_v32 = vld [vmem:[%s523_s2] ss:$0 sm:$0xff]  ;;  %s246_s2 = sshll.u32 %s398_s12, 4  ;;  %s247_s2 = int_to_ptr.vmem [resolvable:$true] %s246_s2 }
   0xd   :  { %v260_v41 = vld [vmem:[%s525_s4] ss:$0 sm:$0xff]  ;;  %s374_s13 = scalar_lea.vmem %s247_s2, 256  ;;  %p379_p1 = scmp.lt.s32.totalorder %s247_s2, %s247_s2 }
   0xe   :  { %p375_p0 = scmp.ne.s32.totalorder %s247_s2, %s374_s13  ;;  %p380_p2 = scmp.lt.s32.totalorder %s374_s13, %s374_s13 }
   0xf   :  { %350 = vmatpush3.bf16.msra.mxu1 %v347_v15 }
  0x10   :  { %352 = vmatprep.subr.bf16.mxu1 %v351_v19  ;;  %p381_p3 = por %p380_p2, %p379_p1 }
  0x12   :  { %p382_p4 = pnand %p381_p3, %p375_p0 }
  0x13   :  { %354 = vmatpush3.bf16.msra.mxu1 %v351_v19 }
  0x14   :  { %356 = vmatprep.subr.bf16.mxu1 %v355_v22 }
  0x17   :  { %358 = vmatpush3.bf16.msra.mxu1 %v355_v22 }
  0x18   :  { %360 = vmatprep.subr.bf16.mxu1 %v359_v25 }
  0x1b   :  { %362 = vmatpush3.bf16.msra.mxu1 %v359_v25 }
  0x1c   :  { %364 = vmatprep.subr.bf16.mxu1 %v363_v28 }
  0x1f   :  { %366 = vmatpush3.bf16.msra.mxu1 %v363_v28 }
  0x20   :  { %368 = vmatprep.subr.bf16.mxu1 %v367_v31 }
  0x23   :  { %370 = vmatpush3.bf16.msra.mxu1 %v367_v31 }
  0xdf   :  { %v295_v33 = vpop.f32.mrb[0].mxu0 }
  0xe0   :  { %v113_v34 = vadd.f32 %v295_v33, %v257_v32  ;;  %v107_v35 = vpop.f32.mrb[1].mxu0 }
  0xe1   :  { %v108_v36 = vadd.f32 %v257_v32, %v107_v35 }
  0xe2   :  { %v117_v38 = vmax.f32 %v113_v34, 0.0 }
  0xe3   :  { %v116_v37 = vmax.f32 %v108_v36, 0.0 }
  0xe5   :  { %328 = vmatprep.mubr.f32.mxu1 %v116_v37 }
  0xe6   :  { %329 = vmatmul.mubr.f32.vlgmr.msra.gmra.mrb[0].mxu1 %v117_v38 }
 0x1b9   :  { %v330_v39 = vpop.f32.mrb[0].mxu1 }
 0x1ba   :  { %214 = vst.msk [vmem:[#allocation2 + $0x8] sm:$0xff] %vm34_vm0, %v330_v39  ;;  %v200_v40 = vpop.f32.mrb[1].mxu1 }
 0x1bb   :  { %213 = vst.msk [vmem:[#allocation2] sm:$0xff] %vm34_vm0, %v200_v40 }
 0x1c1   :  { %v229_v42 = vld [vmem:[#allocation2 + $0x8] sm:$0xff] }
 0x1c2   :  { %v238_v43 = vadd.f32 %v260_v41, %v229_v42  ;;  %v228_v44 = vld [vmem:[#allocation2] sm:$0xff] }
 0x1c3   :  { %v237_v45 = vadd.f32 %v260_v41, %v228_v44 }
 0x1c4   :  { %240 = vst.msk [vmem:[#allocation2 + $0x8] sm:$0xff] %vm34_vm0, %v238_v43 }
 0x1c5   :  { %239 = vst.msk [vmem:[#allocation2] sm:$0xff] %vm34_vm0, %v237_v45 }
 0x1c6   :  { %385 = shalt.err (!%p382_p4)
}
 0x1c7   :  { %s386_s15 = scalar_lea.hbm %s526_s5, 256 }
 0x1c8   :  { %p387_p5 = scmp.ne.s32.totalorder %s526_s5, %s386_s15  ;;  %p390_p6 = scmp.lt.u32.totalorder %s386_s15, %s526_s5 }
 0x1ca   :  { %p392_p7 = pnand %p390_p6, %p387_p5 }
 0x1cc   :  { %395 = shalt.err (!%p392_p7)
}
 0x1cd   :  { %s399_s20 = smov 128   ;;  %s400_s21 = smov 8  }
 0x1ce   :  { %252 = dma.vmem_to_hbm [thread:$0]  %s247_s2, 256, %s526_s5, [#allocation3], %s399_s20, %s399_s20, %s400_s21  }
 0x1cf   :  { %396 = dma.done.wait [#allocation3], 256  }
 0x1d0   :  { %397 = vsyncadd [#allocation3], 4294967040 }
 0x1d1   :  { %256 = vsyncpa [#allocation3], 1 }

</bundles_post_ra>
